<compile_context>
chip_gen: v5e
topology: v5e:2x2
jax: 0.10.0
libtpu: 0.0.40
codegen_flags: <defaults>
</compile_context>

<pallas_src>
import functools
import math

import jax
import jax.numpy as jnp
from jax.experimental import pallas as pl
from jax.experimental.pallas import tpu as pltpu

_INV_SQRT2 = 1.0 / math.sqrt(2.0)
_LN_EPS = 1e-5


def _round_up(x, m):
    return ((x + m - 1) // m) * m


def _gelu_exact(x):
    # torch.nn.GELU(approximate='none')
    return 0.5 * x * (1.0 + jax.lax.erf(x * _INV_SQRT2))


def _multimodal_head_kernel(x_ref, wg_ref, bg_ref, gamma_ref, beta_ref,
                            wl_ref, bl_ref, wog_ref, wol_ref, bo_ref, out_ref):
    x = x_ref[...]                                                  # (TB, H) bf16

    # ---- GNNHead(x0, only_feat=True): dense -> GELU -> LayerNorm (f32 math) ----
    g = jnp.dot(x, wg_ref[...], preferred_element_type=jnp.float32) + bg_ref[...]
    g = _gelu_exact(g)
    mean = jnp.mean(g, axis=-1, keepdims=True)
    var = jnp.mean((g - mean) * (g - mean), axis=-1, keepdims=True)
    g = (g - mean) * jax.lax.rsqrt(var + _LN_EPS)
    g = g * gamma_ref[...] + beta_ref[...]                          # (TB, H) f32

    # ---- RobertaHead(g, only_feat=True): dense -> GELU (returns before norm) ----
    g_bf = g.astype(jnp.bfloat16)
    l = jnp.dot(g_bf, wl_ref[...], preferred_element_type=jnp.float32) + bl_ref[...]
    l = _gelu_exact(l)                                              # (TB, H) f32

    # ---- out_proj(concat([g, l], 1)) == g @ Wo_g + l @ Wo_l + bo (concat fused away) ----
    y = jnp.dot(g_bf, wog_ref[...], preferred_element_type=jnp.float32)
    y = y + jnp.dot(l.astype(jnp.bfloat16), wol_ref[...],
                    preferred_element_type=jnp.float32)
    y = y + bo_ref[...]
    out_ref[...] = y.astype(out_ref.dtype)                          # lane-dense (TB, O_pad)


@functools.partial(jax.jit, static_argnames=("tb_max",))
def multimodal_head(x0, x1, params, *, tb_max=512):
    """MultiModalHead.forward(x0, x1) in eval mode.

    x0: (B, H) float32.  x1 is accepted for signature parity but is unused — the
    original PyTorch forward feeds the GNN-head output into the language head.
    Returns (B, output_dim) float32.
    """
    del x1  # faithfully unused, as in the original module
    B, H = x0.shape
    wo = params["out_w"]                     # (2H, O), stored (in, out)
    bo = params["out_b"]                     # (1, O)
    O = wo.shape[1]

    # Lane-dense output padding (zero columns -> sliced away below).
    O_pad = max(128, _round_up(O, 128))
    wo_pad = jnp.pad(wo, ((0, 0), (0, O_pad - O)))
    bo_pad = jnp.pad(bo, ((0, 0), (0, O_pad - O)))

    # Batch tiling: biggest tile <= tb_max (per-generation knob; 512 amortizes the
    # ~0.35us/step overhead and fits v7x's 32 MiB scoped VMEM with double buffering).
    TB = min(tb_max, _round_up(B, 8))
    B_pad = _round_up(B, TB)
    grid = (B_pad // TB,)

    # bf16 operands for the MXU; accumulation stays f32 inside the kernel.
    x = x0.astype(jnp.bfloat16)
    if B_pad != B:
        x = jnp.pad(x, ((0, B_pad - B), (0, 0)))
    wg = params["gnn_w"].astype(jnp.bfloat16)
    wl = params["lang_w"].astype(jnp.bfloat16)
    wog = wo_pad[:H].astype(jnp.bfloat16)    # g-half of out_proj
    wol = wo_pad[H:].astype(jnp.bfloat16)    # l-half of out_proj

    bg, gamma, beta, bl = (params["gnn_b"], params["ln_gamma"],
                           params["ln_beta"], params["lang_b"])

    const2 = lambda shape: pl.BlockSpec(shape, lambda i: (0, 0))
    in_specs = [
        pl.BlockSpec((TB, H), lambda i: (i, 0)),   # x0 tile (streamed)
        const2((H, H)),                            # Wg   (VMEM-resident)
        const2((1, H)),                            # bg
        const2((1, H)),                            # gamma
        const2((1, H)),                            # beta
        const2((H, H)),                            # Wl
        const2((1, H)),                            # bl
        const2((H, O_pad)),                        # Wo_g
        const2((H, O_pad)),                        # Wo_l
        const2((1, O_pad)),                        # bo
    ]
    out_specs = pl.BlockSpec((TB, O_pad), lambda i: (i, 0))

    flops = 2 * B_pad * (H * H + H * H + 2 * H * O_pad)
    bytes_accessed = (B_pad * H * 2                       # x0 stream (bf16)
                      + 2 * H * H * 2 + 2 * H * O_pad * 2  # weights (bf16)
                      + (3 * H + O_pad) * 4                # biases/gamma/beta (f32)
                      + B_pad * O_pad * 4)                 # output (f32)
    cost = pl.CostEstimate(flops=flops,
                           transcendentals=2 * B_pad * H,
                           bytes_accessed=bytes_accessed)

    out = pl.pallas_call(
        _multimodal_head_kernel,
        out_shape=jax.ShapeDtypeStruct((B_pad, O_pad), jnp.float32),
        grid=grid,
        in_specs=in_specs,
        out_specs=out_specs,
        compiler_params=pltpu.CompilerParams(
            dimension_semantics=("parallel",),
            vmem_limit_bytes=32 * 1024 * 1024),
        cost_estimate=cost,
    )(x, wg, bg, gamma, beta, wl, bl, wog, wol, bo_pad)

    return out[:B, :O]


def init_params(key, hidden_size, output_dim):
    """Deterministic synthetic parameters (shapes match MultiModalHead.__init__).

    Linear weights are stored (in_features, out_features): y = x @ W + b
    (transpose of PyTorch's layout; semantics identical).
    """
    k1, k2, k3, k4, k5, k6 = jax.random.split(key, 6)
    H = hidden_size
    s = 1.0 / math.sqrt(H)
    return {
        # GNNHead: dense(H, H) + LayerNorm(H)
        "gnn_w": jax.random.normal(k1, (H, H), jnp.float32) * s,
        "gnn_b": jax.random.normal(k2, (1, H), jnp.float32) * 0.01,
        "ln_gamma": jnp.ones((1, H), jnp.float32),
        "ln_beta": jnp.zeros((1, H), jnp.float32),
        # RobertaHead: dense(H, H)  (its norm/out_proj are unused on the only_feat path)
        "lang_w": jax.random.normal(k3, (H, H), jnp.float32) * s,
        "lang_b": jax.random.normal(k4, (1, H), jnp.float32) * 0.01,
        # MultiModalHead.out_proj: Linear(2H, output_dim)
        "out_w": jax.random.normal(k5, (2 * H, output_dim), jnp.float32)
                 * (1.0 / math.sqrt(2 * H)),
        "out_b": jax.random.normal(k6, (1, output_dim), jnp.float32) * 0.01,
    }


def _forward_ref(x0, params, *, bf16_matmuls):
    """Pure-JAX reference. bf16_matmuls=True mirrors the kernel's mixed precision."""
    def mm(a, w):
        if bf16_matmuls:
            return jnp.dot(a.astype(jnp.bfloat16), w.astype(jnp.bfloat16),
                           preferred_element_type=jnp.float32)
        return jnp.dot(a, w)

    g = mm(x0, params["gnn_w"]) + params["gnn_b"]
    g = _gelu_exact(g)
    mean = jnp.mean(g, axis=-1, keepdims=True)
    var = jnp.mean((g - mean) ** 2, axis=-1, keepdims=True)
    g = (g - mean) * jax.lax.rsqrt(var + _LN_EPS)
    g = g * params["ln_gamma"] + params["ln_beta"]
    l = mm(g, params["lang_w"]) + params["lang_b"]
    l = _gelu_exact(l)
    x = jnp.concatenate([g, l], axis=1)
    return mm(x, params["out_w"]) + params["out_b"]


if __name__ == "__main__":
    # Small config consistent with the module: hidden_size=32, num_tasks=1, num_labels=2.
    batch, hidden_size, output_dim = 8, 32, 2

    key = jax.random.PRNGKey(0)
    kp, k0, k1 = jax.random.split(key, 3)
    params = init_params(kp, hidden_size, output_dim)
    x0 = jax.random.normal(k0, (batch, hidden_size), jnp.float32)
    x1 = jax.random.normal(k1, (batch, hidden_size), jnp.float32)  # unused by forward

    out = multimodal_head(x0, x1, params)
    out = jax.block_until_ready(out)
    assert out.shape == (batch, output_dim)

    # Correctness vs a reference that mirrors the kernel's mixed precision exactly.
    ref = _forward_ref(x0, params, bf16_matmuls=True)
    assert jnp.allclose(out, ref, atol=2e-3, rtol=2e-3), "mismatch vs reference"

    # TODO(synk): dropout is treated as identity (eval mode); training-mode dropout
    # would need pltpu.prng_seed / prng_random_bits inside the kernel.
    print("KERNEL_OK")
</pallas_src>

<mosaic_0001>
module attributes {stable_mosaic.version = 11 : i64} {
  func.func @_multimodal_head_kernel(%arg0: i32, %arg1: memref<8x32xbf16, #tpu.memory_space<vmem>>, %arg2: memref<32x32xbf16, #tpu.memory_space<vmem>>, %arg3: memref<1x32xf32, #tpu.memory_space<vmem>>, %arg4: memref<1x32xf32, #tpu.memory_space<vmem>>, %arg5: memref<1x32xf32, #tpu.memory_space<vmem>>, %arg6: memref<32x32xbf16, #tpu.memory_space<vmem>>, %arg7: memref<1x32xf32, #tpu.memory_space<vmem>>, %arg8: memref<32x128xbf16, #tpu.memory_space<vmem>>, %arg9: memref<32x128xbf16, #tpu.memory_space<vmem>>, %arg10: memref<1x128xf32, #tpu.memory_space<vmem>>, %arg11: memref<8x128xf32, #tpu.memory_space<vmem>>) attributes {dimension_semantics = [#tpu.dimension_semantics<parallel>], iteration_bounds = array<i64: 1>, scalar_prefetch = 0 : i64, scratch_operands = 0 : i64, tpu.core_type = #tpu.core_type<tc>, window_params = [{transform_indices = @transform_0, window_bounds = array<i64: 8, 32>}, {pipeline_mode = #tpu.pipeline_mode<synchronous>, transform_indices = @transform_1, window_bounds = array<i64: 32, 32>}, {pipeline_mode = #tpu.pipeline_mode<synchronous>, transform_indices = @transform_2, window_bounds = array<i64: 1, 32>}, {pipeline_mode = #tpu.pipeline_mode<synchronous>, transform_indices = @transform_3, window_bounds = array<i64: 1, 32>}, {pipeline_mode = #tpu.pipeline_mode<synchronous>, transform_indices = @transform_4, window_bounds = array<i64: 1, 32>}, {pipeline_mode = #tpu.pipeline_mode<synchronous>, transform_indices = @transform_5, window_bounds = array<i64: 32, 32>}, {pipeline_mode = #tpu.pipeline_mode<synchronous>, transform_indices = @transform_6, window_bounds = array<i64: 1, 32>}, {pipeline_mode = #tpu.pipeline_mode<synchronous>, transform_indices = @transform_7, window_bounds = array<i64: 32, 128>}, {pipeline_mode = #tpu.pipeline_mode<synchronous>, transform_indices = @transform_8, window_bounds = array<i64: 32, 128>}, {pipeline_mode = #tpu.pipeline_mode<synchronous>, transform_indices = @transform_9, window_bounds = array<i64: 1, 128>}, {transform_indices = @transform_10, window_bounds = array<i64: 8, 128>}]} {
    %c0 = arith.constant 0 : index
    %c0_0 = arith.constant 0 : index
    %0 = vector.load %arg1[%c0, %c0_0] : memref<8x32xbf16, #tpu.memory_space<vmem>>, vector<8x32xbf16>
    %c0_1 = arith.constant 0 : index
    %c0_2 = arith.constant 0 : index
    %1 = vector.load %arg2[%c0_1, %c0_2] : memref<32x32xbf16, #tpu.memory_space<vmem>>, vector<32x32xbf16>
    %cst = arith.constant dense<0.000000e+00> : vector<8x32xf32>
    %2 = tpu.matmul %0, %1, %cst {dimension_numbers = #tpu.dot_dimension_numbers<[1], [0], [0], [1], [0, 0, 1, 1], [], []>} : vector<8x32xbf16>, vector<32x32xbf16>, vector<8x32xf32> -> vector<8x32xf32>
    %c0_3 = arith.constant 0 : index
    %c0_4 = arith.constant 0 : index
    %3 = vector.load %arg3[%c0_3, %c0_4] : memref<1x32xf32, #tpu.memory_space<vmem>>, vector<1x32xf32>
    %4 = vector.broadcast %3 : vector<1x32xf32> to vector<8x32xf32>
    %5 = arith.addf %2, %4 : vector<8x32xf32>
    %cst_5 = arith.constant 5.000000e-01 : f32
    %6 = vector.broadcast %cst_5 : f32 to vector<8x32xf32>
    %7 = arith.mulf %6, %5 : vector<8x32xf32>
    %cst_6 = arith.constant 0.707106769 : f32
    %8 = vector.broadcast %cst_6 : f32 to vector<8x32xf32>
    %9 = arith.mulf %5, %8 : vector<8x32xf32>
    %10 = math.erf %9 : vector<8x32xf32>
    %cst_7 = arith.constant 1.000000e+00 : f32
    %11 = vector.broadcast %cst_7 : f32 to vector<8x32xf32>
    %12 = arith.addf %11, %10 : vector<8x32xf32>
    %13 = arith.mulf %7, %12 : vector<8x32xf32>
    %cst_8 = arith.constant dense<0.000000e+00> : vector<8xf32>
    %14 = vector.multi_reduction <add>, %13, %cst_8 [1] : vector<8x32xf32> to vector<8xf32>
    %15 = vector.shape_cast %14 : vector<8xf32> to vector<8x1xf32>
    %cst_9 = arith.constant 3.200000e+01 : f32
    %16 = vector.broadcast %cst_9 : f32 to vector<8x1xf32>
    %17 = arith.divf %15, %16 : vector<8x1xf32>
    %18 = vector.broadcast %17 : vector<8x1xf32> to vector<8x32xf32>
    %19 = arith.subf %13, %18 : vector<8x32xf32>
    %20 = vector.broadcast %17 : vector<8x1xf32> to vector<8x32xf32>
    %21 = arith.subf %13, %20 : vector<8x32xf32>
    %22 = arith.mulf %19, %21 : vector<8x32xf32>
    %cst_10 = arith.constant dense<0.000000e+00> : vector<8xf32>
    %23 = vector.multi_reduction <add>, %22, %cst_10 [1] : vector<8x32xf32> to vector<8xf32>
    %24 = vector.shape_cast %23 : vector<8xf32> to vector<8x1xf32>
    %cst_11 = arith.constant 3.200000e+01 : f32
    %25 = vector.broadcast %cst_11 : f32 to vector<8x1xf32>
    %26 = arith.divf %24, %25 : vector<8x1xf32>
    %27 = vector.broadcast %17 : vector<8x1xf32> to vector<8x32xf32>
    %28 = arith.subf %13, %27 : vector<8x32xf32>
    %cst_12 = arith.constant 9.99999974E-6 : f32
    %29 = vector.broadcast %cst_12 : f32 to vector<8x1xf32>
    %30 = arith.addf %26, %29 : vector<8x1xf32>
    %31 = math.rsqrt %30 : vector<8x1xf32>
    %32 = vector.broadcast %31 : vector<8x1xf32> to vector<8x32xf32>
    %33 = arith.mulf %28, %32 : vector<8x32xf32>
    %c0_13 = arith.constant 0 : index
    %c0_14 = arith.constant 0 : index
    %34 = vector.load %arg4[%c0_13, %c0_14] : memref<1x32xf32, #tpu.memory_space<vmem>>, vector<1x32xf32>
    %35 = vector.broadcast %34 : vector<1x32xf32> to vector<8x32xf32>
    %36 = arith.mulf %33, %35 : vector<8x32xf32>
    %c0_15 = arith.constant 0 : index
    %c0_16 = arith.constant 0 : index
    %37 = vector.load %arg5[%c0_15, %c0_16] : memref<1x32xf32, #tpu.memory_space<vmem>>, vector<1x32xf32>
    %38 = vector.broadcast %37 : vector<1x32xf32> to vector<8x32xf32>
    %39 = arith.addf %36, %38 : vector<8x32xf32>
    %40 = arith.truncf %39 : vector<8x32xf32> to vector<8x32xbf16>
    %c0_17 = arith.constant 0 : index
    %c0_18 = arith.constant 0 : index
    %41 = vector.load %arg6[%c0_17, %c0_18] : memref<32x32xbf16, #tpu.memory_space<vmem>>, vector<32x32xbf16>
    %cst_19 = arith.constant dense<0.000000e+00> : vector<8x32xf32>
    %42 = tpu.matmul %40, %41, %cst_19 {dimension_numbers = #tpu.dot_dimension_numbers<[1], [0], [0], [1], [0, 0, 1, 1], [], []>} : vector<8x32xbf16>, vector<32x32xbf16>, vector<8x32xf32> -> vector<8x32xf32>
    %c0_20 = arith.constant 0 : index
    %c0_21 = arith.constant 0 : index
    %43 = vector.load %arg7[%c0_20, %c0_21] : memref<1x32xf32, #tpu.memory_space<vmem>>, vector<1x32xf32>
    %44 = vector.broadcast %43 : vector<1x32xf32> to vector<8x32xf32>
    %45 = arith.addf %42, %44 : vector<8x32xf32>
    %cst_22 = arith.constant 5.000000e-01 : f32
    %46 = vector.broadcast %cst_22 : f32 to vector<8x32xf32>
    %47 = arith.mulf %46, %45 : vector<8x32xf32>
    %cst_23 = arith.constant 0.707106769 : f32
    %48 = vector.broadcast %cst_23 : f32 to vector<8x32xf32>
    %49 = arith.mulf %45, %48 : vector<8x32xf32>
    %50 = math.erf %49 : vector<8x32xf32>
    %cst_24 = arith.constant 1.000000e+00 : f32
    %51 = vector.broadcast %cst_24 : f32 to vector<8x32xf32>
    %52 = arith.addf %51, %50 : vector<8x32xf32>
    %53 = arith.mulf %47, %52 : vector<8x32xf32>
    %c0_25 = arith.constant 0 : index
    %c0_26 = arith.constant 0 : index
    %54 = vector.load %arg8[%c0_25, %c0_26] : memref<32x128xbf16, #tpu.memory_space<vmem>>, vector<32x128xbf16>
    %cst_27 = arith.constant dense<0.000000e+00> : vector<8x128xf32>
    %55 = tpu.matmul %40, %54, %cst_27 {dimension_numbers = #tpu.dot_dimension_numbers<[1], [0], [0], [1], [0, 0, 1, 1], [], []>} : vector<8x32xbf16>, vector<32x128xbf16>, vector<8x128xf32> -> vector<8x128xf32>
    %56 = arith.truncf %53 : vector<8x32xf32> to vector<8x32xbf16>
    %c0_28 = arith.constant 0 : index
    %c0_29 = arith.constant 0 : index
    %57 = vector.load %arg9[%c0_28, %c0_29] : memref<32x128xbf16, #tpu.memory_space<vmem>>, vector<32x128xbf16>
    %cst_30 = arith.constant dense<0.000000e+00> : vector<8x128xf32>
    %58 = tpu.matmul %56, %57, %cst_30 {dimension_numbers = #tpu.dot_dimension_numbers<[1], [0], [0], [1], [0, 0, 1, 1], [], []>} : vector<8x32xbf16>, vector<32x128xbf16>, vector<8x128xf32> -> vector<8x128xf32>
    %59 = arith.addf %55, %58 : vector<8x128xf32>
    %c0_31 = arith.constant 0 : index
    %c0_32 = arith.constant 0 : index
    %60 = vector.load %arg10[%c0_31, %c0_32] : memref<1x128xf32, #tpu.memory_space<vmem>>, vector<1x128xf32>
    %61 = vector.broadcast %60 : vector<1x128xf32> to vector<8x128xf32>
    %62 = arith.addf %59, %61 : vector<8x128xf32>
    %c0_33 = arith.constant 0 : index
    %c0_34 = arith.constant 0 : index
    %63 = vector.load %arg11[%c0_33, %c0_34] : memref<8x128xf32, #tpu.memory_space<vmem>>, vector<8x128xf32>
    tpu.vector_store %arg11[%c0_33, %c0_34], %62 {strides = array<i32>} : memref<8x128xf32, #tpu.memory_space<vmem>>, vector<8x128xf32>,
    return
  }
  func.func @transform_0(%arg0: i32) -> (i32, i32) {
    %c0_i32 = arith.constant 0 : i32
    %c0_i32_0 = arith.constant 0 : i32
    return %arg0, %c0_i32 : i32, i32
  }
  func.func @transform_1(%arg0: i32) -> (i32, i32) {
    %c0_i32 = arith.constant 0 : i32
    %c0_i32_0 = arith.constant 0 : i32
    %c0_i32_1 = arith.constant 0 : i32
    return %c0_i32, %c0_i32_0 : i32, i32
  }
  func.func @transform_2(%arg0: i32) -> (i32, i32) {
    %c0_i32 = arith.constant 0 : i32
    %c0_i32_0 = arith.constant 0 : i32
    %c0_i32_1 = arith.constant 0 : i32
    return %c0_i32, %c0_i32_0 : i32, i32
  }
  func.func @transform_3(%arg0: i32) -> (i32, i32) {
    %c0_i32 = arith.constant 0 : i32
    %c0_i32_0 = arith.constant 0 : i32
    %c0_i32_1 = arith.constant 0 : i32
    return %c0_i32, %c0_i32_0 : i32, i32
  }
  func.func @transform_4(%arg0: i32) -> (i32, i32) {
    %c0_i32 = arith.constant 0 : i32
    %c0_i32_0 = arith.constant 0 : i32
    %c0_i32_1 = arith.constant 0 : i32
    return %c0_i32, %c0_i32_0 : i32, i32
  }
  func.func @transform_5(%arg0: i32) -> (i32, i32) {
    %c0_i32 = arith.constant 0 : i32
    %c0_i32_0 = arith.constant 0 : i32
    %c0_i32_1 = arith.constant 0 : i32
    return %c0_i32, %c0_i32_0 : i32, i32
  }
  func.func @transform_6(%arg0: i32) -> (i32, i32) {
    %c0_i32 = arith.constant 0 : i32
    %c0_i32_0 = arith.constant 0 : i32
    %c0_i32_1 = arith.constant 0 : i32
    return %c0_i32, %c0_i32_0 : i32, i32
  }
  func.func @transform_7(%arg0: i32) -> (i32, i32) {
    %c0_i32 = arith.constant 0 : i32
    %c0_i32_0 = arith.constant 0 : i32
    %c0_i32_1 = arith.constant 0 : i32
    return %c0_i32, %c0_i32_0 : i32, i32
  }
  func.func @transform_8(%arg0: i32) -> (i32, i32) {
    %c0_i32 = arith.constant 0 : i32
    %c0_i32_0 = arith.constant 0 : i32
    %c0_i32_1 = arith.constant 0 : i32
    return %c0_i32, %c0_i32_0 : i32, i32
  }
  func.func @transform_9(%arg0: i32) -> (i32, i32) {
    %c0_i32 = arith.constant 0 : i32
    %c0_i32_0 = arith.constant 0 : i32
    %c0_i32_1 = arith.constant 0 : i32
    return %c0_i32, %c0_i32_0 : i32, i32
  }
  func.func @transform_10(%arg0: i32) -> (i32, i32) {
    %c0_i32 = arith.constant 0 : i32
    %c0_i32_0 = arith.constant 0 : i32
    return %arg0, %c0_i32 : i32, i32
  }
}

</mosaic_0001>

<bundles_post_ra>
// kernel: multimodal_head.1
= control target key start
LH: loop header
LB: loop body
LE: loop exit
PB: predicated region body
PF: predicated region fallthrough
CT: control target
= control target key end

     0   :  { %vm57_vm0 = vcmask 261120   ;;  %v370_v47 = vmov 32.0   ;;  %s477_s1 = inlined_call_operand.vmem [shape: bf16[32,32], index: 1, kind: input, shape index: {}]   ;;  %s478_s2 = inlined_call_operand.vmem [shape: f32[1,32], index: 2, kind: input, shape index: {}]   ;;  %s479_s0 = inlined_call_operand.vmem [shape: bf16[8,32], index: 0, kind: input, shape index: {}]   ;;  %s480_s3 = inlined_call_operand.vmem [shape: f32[1,32], index: 3, kind: input, shape index: {}]   ;;  %s481_s4 = inlined_call_operand.vmem [shape: f32[1,32], index: 4, kind: input, shape index: {}]   ;;  %s482_s6 = inlined_call_operand.vmem [shape: f32[1,32], index: 6, kind: input, shape index: {}]   ;;  %s483_s5 = inlined_call_operand.vmem [shape: bf16[32,32], index: 5, kind: input, shape index: {}]   ;;  %s484_s7 = inlined_call_operand.vmem [shape: bf16[32,128], index: 7, kind: input, shape index: {}]   ;;  %s485_s9 = inlined_call_operand.vmem [shape: f32[1,128], index: 9, kind: input, shape index: {}]   ;;  %s486_s8 = inlined_call_operand.vmem [shape: bf16[32,128], index: 8, kind: input, shape index: {}]   ;;  %s487_s10 = inlined_call_operand.vmem [shape: f32[8,128], index: 10, kind: output, shape index: {}]  }
   0x1   :  { %v349_v0 = vld [vmem:[%s477_s1 + $0x8] sm:$0xff]  ;;  %v348_v1 = vld [vmem:[%s477_s1] sm:$0xff] }
   0x2   :  { %67 = vmatpush.bf16.msra.mxu0 %v349_v0  ;;  %v36_v2 = vld [vmem:[%s479_s0] sm:$0xf]  ;;  %v351_v59 = vld [vmem:[%s483_s5 + $0x8] sm:$0xff] }
   0x3   :  { %v357_v3 = vld [vmem:[%s478_s2] ss:$0 sm:$0xff]  ;;  %v353_v60 = vld [vmem:[%s484_s7 + $0x8] sm:$0xff]  ;;  %187 = vmatpush.bf16.msra.mxu1 %v351_v59 }
   0x4   :  { %293 = vmatpush.bf16.msra.mxu3 %v353_v60  ;;  %v350_v61 = vld [vmem:[%s483_s5] sm:$0xff] }
   0x5   :  { %v352_v62 = vld [vmem:[%s484_s7] sm:$0xff] }
   0x6   :  { %68 = vmatpush.bf16.msra.mxu0 %v348_v1 }
   0x7   :  { %188 = vmatpush.bf16.msra.mxu1 %v350_v61 }
   0x8   :  { %294 = vmatpush.bf16.msra.mxu3 %v352_v62 }
   0x9   :  { %318 = vmatmul.msk.bf16.vlgmr.msra.gmra.mxu0 %vm57_vm0, %v36_v2 }
  0x86   :  { %v70_v4 = vpop.f32.mrf.mxu0 }
  0x87   :  { %v71_v5 = vadd.f32 %v357_v3, %v70_v4 }
  0x89   :  { %v75_v6 = vmul.f32 0.70710677, %v71_v5  ;;  %v74_v43 = vmul.f32 0.5, %v71_v5 }
  0x8b   :  { %v76_v7 = vmul.f32 %v75_v6, %v75_v6 }
  0x8d   :  { %v77_v8 = vmin.f32 %v76_v7, 16.0 }
  0x8e   :  { %v72_v9 = vpop.f32.mrf.mxu0 }
  0x8f   :  { %v78_v10 = vmul.f32 2.1237322e-06, %v77_v8  ;;  %v89_v11 = vmul.f32 3.8918573e-05, %v77_v8 }
  0x91   :  { %v79_v12 = vadd.f32 0.00028619796, %v78_v10  ;;  %v90_v13 = vadd.f32 0.001143296, %v89_v11  ;;  %v359_v11 = vld [vmem:[%s481_s4] ss:$0 sm:$0xff] }
  0x93   :  { %v80_v14 = vmul.f32 %v79_v12, %v77_v8  ;;  %v91_v15 = vmul.f32 %v90_v13, %v77_v8 }
  0x95   :  { %v92_v16 = vadd.f32 0.014752088, %v91_v15  ;;  %v81_v17 = vadd.f32 0.0036580483, %v80_v14  ;;  %v360_v15 = vld [vmem:[%s482_s6] ss:$0 sm:$0xff] }
  0x97   :  { %v93_v18 = vmul.f32 %v92_v16, %v77_v8  ;;  %v82_v20 = vmul.f32 %v81_v17, %v77_v8 }
  0x99   :  { %v94_v19 = vadd.f32 0.112945676, %v93_v18  ;;  %v83_v23 = vadd.f32 0.05243302, %v82_v20 }
  0x9b   :  { %v95_v21 = vmul.f32 %v94_v19, %v77_v8  ;;  %v84_v26 = vmul.f32 %v83_v23, %v77_v8 }
  0x9d   :  { %v96_v22 = vadd.f32 0.4994258, %v95_v21  ;;  %v85_v27 = vadd.f32 0.18741608, %v84_v26 }
  0x9f   :  { %v97_v24 = vmul.f32 %v96_v22, %v77_v8  ;;  %v86_v29 = vmul.f32 %v85_v27, %v77_v8  ;;  %v358_v8 = vld [vmem:[%s480_s3] ss:$0 sm:$0xff] }
  0xa1   :  { %v98_v25 = vadd.f32 1.0, %v97_v24  ;;  %v87_v33 = vadd.f32 1.1283791, %v86_v29 }
  0xa3   :  { %362 = vrcp.f32 %v98_v25  ;;  %v110_v32 = vand.u32 2147483648, %v98_v25  ;;  %v108_v35 = vand.u32 2147483647, %v98_v25  ;;  %vm104_vm2 = vweird.f32 %v98_v25 }
  0xa4   :  { %v88_v38 = vmul.f32 %v87_v33, %v75_v6  ;;  %364 = vrcp.f32 %v370_v47  ;;  %v354_v33 = vld [vmem:[%s486_s8] sm:$0xff] }
  0xa5   :  { %v111_v37 = vor.u32 1.1754944e-38, %v110_v32  ;;  %vm109_vm4 = vcmp.eq.f32.partialorder %v108_v35, 8.507059e+37 }
  0xa9   :  { %v363_v28 = vpop.eup %362 }
  0xaa   :  { %v100_v30 = vmul.f32 %v363_v28, %v98_v25  ;;  %vm105_vm1 = vweird.f32 %v363_v28  ;;  %v365_v48 = vpop.eup %364 }
  0xab   :  { %vm106_vm3 = vmor %vm104_vm2, %vm105_vm1  ;;  %v122_v49 = vmul.f32 32.0, %v365_v48  ;;  %vm126_vm5 = vweird.f32 %v365_v48 }
  0xac   :  { %v101_v31 = vsub.f32 1.0, %v100_v30  ;;  %v355_v30 = vld [vmem:[%s486_s8 + $0x8] sm:$0xff] }
  0xad   :  { %v123_v50 = vsub.f32 1.0, %v122_v49  ;;  %268 = vmatpush.bf16.msra.mxu2 %v355_v30 }
  0xae   :  { %v102_v34 = vmul.f32 %v363_v28, %v101_v31 }
  0xaf   :  { %v124_v51 = vmul.f32 %v365_v48, %v123_v50 }
  0xb0   :  { %v103_v36 = vadd.f32 %v363_v28, %v102_v34 }
  0xb1   :  { %v125_v52 = vadd.f32 %v365_v48, %v124_v51  ;;  %269 = vmatpush.bf16.msra.mxu2 %v354_v33 }
  0xb2   :  { %v107_v39 = vsel %vm106_vm3, %v363_v28, %v103_v36 }
  0xb3   :  { %v112_v40 = vsel %vm109_vm4, %v111_v37, %v107_v39  ;;  %v127_v53 = vsel %vm126_vm5, %v365_v48, %v125_v52 }
  0xb4   :  { %v113_v41 = vmul.f32 %v112_v40, %v88_v38 }
  0xb6   :  { %v319_v42 = vclamps-f32 %v113_v41, 1.0 }
  0xb8   :  { %v116_v44 = vadd.f32 1.0, %v319_v42 }
  0xba   :  { %v117_v45 = vmul.f32 %v116_v44, %v74_v43 }
  0xbc   :  { %v118_v46 = vsel %vm57_vm0, %v117_v45, 0.0 }
  0xbd   :  { %119 = vadd.xlane.f32.xlu0 %v118_v46 }
 0x130   :  { %v120_v54 = vpop.xlane.xlu0 %119 }
 0x131   :  { %v128_v55 = vmul.f32 %v127_v53, %v120_v54 }
 0x133   :  { %v129_v56 = vsub.f32 %v117_v45, %v128_v55 }
 0x135   :  { %v130_v57 = vmul.f32 %v129_v56, %v129_v56 }
 0x137   :  { %v131_v58 = vsel %vm57_vm0, %v130_v57, 0.0 }
 0x138   :  { %132 = vadd.xlane.f32.xlu0 %v131_v58 }
 0x1ab   :  { %v133_v63 = vpop.xlane.xlu0 %132 }
 0x1ac   :  { %v134_v0 = vmul.f32 %v133_v63, %v127_v53  ;;  %v361_v63 = vld [vmem:[%s485_s9] ss:$0 sm:$0xff] }
 0x1ae   :  { %v135_v1 = vadd.f32 1e-05, %v134_v0 }
 0x1b0   :  { %366 = vrsqrt.f32 %v135_v1  ;;  %vm142_vm7 = vweird.f32 %v135_v1 }
 0x1b6   :  { %v367_v2 = vpop.eup %366 }
 0x1b7   :  { %v137_v3 = vmul.f32 %v367_v2, %v135_v1  ;;  %vm143_vm6 = vweird.f32 %v367_v2 }
 0x1b8   :  { %vm144_vm8 = vmor %vm142_vm7, %vm143_vm6 }
 0x1b9   :  { %v138_v4 = vmul.f32 %v367_v2, %v137_v3 }
 0x1bb   :  { %v139_v5 = vmul.f32 0.5, %v138_v4 }
 0x1bd   :  { %v140_v6 = vsub.f32 1.5, %v139_v5 }
 0x1bf   :  { %v141_v7 = vmul.f32 %v367_v2, %v140_v6 }
 0x1c1   :  { %v145_v9 = vsel %vm144_vm8, %v367_v2, %v141_v7 }
 0x1c2   :  { %v146_v10 = vmul.f32 %v145_v9, %v129_v56 }
 0x1c4   :  { %v151_v12 = vmul.f32 %v358_v8, %v146_v10 }
 0x1c6   :  { %v156_v13 = vadd.f32 %v359_v11, %v151_v12 }
 0x1c8   :  { %v157_v14 = vpack.c.bf16 %v156_v13, %v156_v13 }
 0x1ca   :  { %328 = vmatmul.msk.bf16.vlgmr.msra.gmra.mxu1 %vm57_vm0, %v157_v14  ;;  %347 = vmatmul.msk.bf16.vlgmr.msra.gmra.mxu3 %vm57_vm0, %v157_v14 }
 0x247   :  { %v190_v16 = vpop.f32.mrf.mxu1 }
 0x248   :  { %v191_v17 = vadd.f32 %v360_v15, %v190_v16 }
 0x24a   :  { %v195_v18 = vmul.f32 0.70710677, %v191_v17  ;;  %v194_v59 = vmul.f32 0.5, %v191_v17 }
 0x24c   :  { %v196_v19 = vmul.f32 %v195_v18, %v195_v18 }
 0x24d   :  { %v296_v20 = vpop.f32.mrf.mxu3 }
 0x24e   :  { %v197_v21 = vmin.f32 %v196_v19, 16.0 }
 0x24f   :  { %v192_v22 = vpop.f32.mrf.mxu1 }
 0x250   :  { %v198_v23 = vmul.f32 2.1237322e-06, %v197_v21  ;;  %v209_v24 = vmul.f32 3.8918573e-05, %v197_v21 }
 0x252   :  { %v199_v25 = vadd.f32 0.00028619796, %v198_v23  ;;  %v210_v26 = vadd.f32 0.001143296, %v209_v24 }
 0x254   :  { %v200_v27 = vmul.f32 %v199_v25, %v197_v21  ;;  %v211_v28 = vmul.f32 %v210_v26, %v197_v21 }
 0x255   :  { %v298_v29 = vpop.f32.mrf.mxu3 }
 0x256   :  { %v212_v31 = vadd.f32 0.014752088, %v211_v28  ;;  %v201_v32 = vadd.f32 0.0036580483, %v200_v27 }
 0x258   :  { %v213_v34 = vmul.f32 %v212_v31, %v197_v21  ;;  %v202_v36 = vmul.f32 %v201_v32, %v197_v21 }
 0x25a   :  { %v214_v35 = vadd.f32 0.112945676, %v213_v34  ;;  %v203_v39 = vadd.f32 0.05243302, %v202_v36 }
 0x25c   :  { %v215_v37 = vmul.f32 %v214_v35, %v197_v21  ;;  %v204_v42 = vmul.f32 %v203_v39, %v197_v21 }
 0x25e   :  { %v216_v38 = vadd.f32 0.4994258, %v215_v37  ;;  %v205_v43 = vadd.f32 0.18741608, %v204_v42 }
 0x260   :  { %v217_v40 = vmul.f32 %v216_v38, %v197_v21  ;;  %v206_v45 = vmul.f32 %v205_v43, %v197_v21 }
 0x262   :  { %v218_v41 = vadd.f32 1.0, %v217_v40  ;;  %v207_v49 = vadd.f32 1.1283791, %v206_v45 }
 0x264   :  { %368 = vrcp.f32 %v218_v41  ;;  %v230_v48 = vand.u32 2147483648, %v218_v41  ;;  %v228_v51 = vand.u32 2147483647, %v218_v41  ;;  %vm224_vm10 = vweird.f32 %v218_v41 }
 0x265   :  { %v208_v54 = vmul.f32 %v207_v49, %v195_v18 }
 0x266   :  { %v231_v53 = vor.u32 1.1754944e-38, %v230_v48  ;;  %vm229_vm12 = vcmp.eq.f32.partialorder %v228_v51, 8.507059e+37 }
 0x26a   :  { %v369_v44 = vpop.eup %368 }
 0x26b   :  { %v220_v46 = vmul.f32 %v369_v44, %v218_v41  ;;  %vm225_vm9 = vweird.f32 %v369_v44 }
 0x26c   :  { %vm226_vm11 = vmor %vm224_vm10, %vm225_vm9 }
 0x26d   :  { %v221_v47 = vsub.f32 1.0, %v220_v46 }
 0x26f   :  { %v222_v50 = vmul.f32 %v369_v44, %v221_v47 }
 0x271   :  { %v223_v52 = vadd.f32 %v369_v44, %v222_v50 }
 0x273   :  { %v227_v55 = vsel %vm226_vm11, %v369_v44, %v223_v52 }
 0x274   :  { %v232_v56 = vsel %vm229_vm12, %v231_v53, %v227_v55 }
 0x275   :  { %v233_v57 = vmul.f32 %v232_v56, %v208_v54 }
 0x277   :  { %v329_v58 = vclamps-f32 %v233_v57, 1.0 }
 0x279   :  { %v236_v60 = vadd.f32 1.0, %v329_v58 }
 0x27b   :  { %v237_v61 = vmul.f32 %v236_v60, %v194_v59 }
 0x27d   :  { %v242_v62 = vpack.c.bf16 %v237_v61, %v237_v61 }
 0x27f   :  { %338 = vmatmul.msk.bf16.vlgmr.msra.gmra.mxu2 %vm57_vm0, %v242_v62 }
 0x302   :  { %v271_v0 = vpop.f32.mrf.mxu2 }
 0x303   :  { %v297_v1 = vadd.f32 %v296_v20, %v271_v0 }
 0x305   :  { %v304_v2 = vadd.f32 %v361_v63, %v297_v1 }
 0x307   :  { %305 = vst [vmem:[%s487_s10] sm:$0xff] %v304_v2 }
 0x30a   :  { %v273_v3 = vpop.f32.mrf.mxu2 }

</bundles_post_ra>
